<compile_context>
chip_gen: v7x
topology: tpu7x:2x2x1
jax: 0.10.0
libtpu: 0.0.40
codegen_flags: <defaults>
</compile_context>

<pallas_src>
import jax
import jax.numpy as jnp
from jax.experimental import pallas as pl
from jax.experimental.pallas import tpu as pltpu


_VMEM_LIMIT = 32 * 1024 * 1024          # safe on v5e/v6e/v7x, with headroom
_TILE_BYTE_BUDGET = 2 * 1024 * 1024     # per-operand f32 tile target


def _pick_seq_tile(seq_len, bytes_per_row, budget=_TILE_BYTE_BUDGET):
    """Largest multiple-of-8 divisor of seq_len whose tile fits `budget`."""
    if seq_len * bytes_per_row <= budget or seq_len <= 8:
        return seq_len
    target = max(8, budget // max(1, bytes_per_row))
    t = min((target // 8) * 8, (seq_len // 8) * 8)
    while t >= 8:
        if seq_len % t == 0:
            return t
        t -= 8
    return seq_len  # no nice divisor found; fall back to the full axis


# ---------------------------------------------------------------------------
# Fused hidden-state losses: plain MSE + masked MSE in one streaming pass.
# ---------------------------------------------------------------------------

def _fused_hidden_kernel(t_ref, s_ref, m_ref, sdd_ref, sddm_ref,
                         acc_dd, acc_ddm):
    """One sequence tile of the fused (plain + masked) squared-diff sums."""
    i = pl.program_id(0)

    @pl.when(i == 0)
    def _init():
        acc_dd[...] = jnp.zeros_like(acc_dd)
        acc_ddm[...] = jnp.zeros_like(acc_ddm)

    t = t_ref[...].astype(jnp.float32)          # (B, tq, H)
    s = s_ref[...].astype(jnp.float32)
    m = m_ref[...].astype(jnp.float32)          # (B, tq, 1), cast in-kernel
    d = t - s
    acc_dd[...] += d * d                        # pure VPU; no per-tile reduce
    dm = d * m
    acc_ddm[...] += dm * dm

    @pl.when(i == pl.num_programs(0) - 1)
    def _fin():                                 # single cross-lane reduce
        sdd_ref[...] = jnp.sum(acc_dd[...]).reshape(1, 1)
        sddm_ref[...] = jnp.sum(acc_ddm[...]).reshape(1, 1)


def _fused_hidden_sums(t, s, mask3):
    B, S, H = t.shape
    tq = _pick_seq_tile(S, B * H * 4)
    nq = S // tq
    grid_spec = pltpu.PrefetchScalarGridSpec(
        num_scalar_prefetch=0,
        grid=(nq,),
        in_specs=[
            pl.BlockSpec((B, tq, H), lambda i: (0, i, 0)),
            pl.BlockSpec((B, tq, H), lambda i: (0, i, 0)),
            pl.BlockSpec((B, tq, 1), lambda i: (0, i, 0)),
        ],
        out_specs=[
            pl.BlockSpec((1, 1), lambda i: (0, 0)),
            pl.BlockSpec((1, 1), lambda i: (0, 0)),
        ],
        scratch_shapes=[
            pltpu.VMEM((B, tq, H), jnp.float32),
            pltpu.VMEM((B, tq, H), jnp.float32),
        ],
    )
    sdd, sddm = pl.pallas_call(
        _fused_hidden_kernel,
        out_shape=(jax.ShapeDtypeStruct((1, 1), jnp.float32),
                   jax.ShapeDtypeStruct((1, 1), jnp.float32)),
        grid_spec=grid_spec,
        compiler_params=pltpu.CompilerParams(
            dimension_semantics=("arbitrary",),
            vmem_limit_bytes=_VMEM_LIMIT),
    )(t, s, mask3)
    return sdd[0, 0], sddm[0, 0]


def fused_hidden_losses(t_hid, s_hid, mask):
    """Returns (plain MSE, masked MSE) for a [B,S,H] pair with one HBM pass."""
    B, S, H = t_hid.shape
    mask3 = mask.reshape(B, S, 1)               # native dtype; cast in kernel
    sdd, sddm = _fused_hidden_sums(t_hid, s_hid, mask3)
    mse_val = sdd / float(B * S * H)
    # Mask-derived denominator hoisted out of the streaming loop (tiny [B,S]).
    denom = jnp.sum(mask.astype(jnp.float32)) * float(H)
    return mse_val, sddm / denom


# ---------------------------------------------------------------------------
# Masked attention-map MSE, tiled over (batch*heads, query tiles).
# ---------------------------------------------------------------------------

def _attention_mse_kernel(t_ref, s_ref, mq_ref, mk_ref, o_ref, acc_ref):
    """One (batch*head, query-tile) block of the masked squared-diff sum."""
    i = pl.program_id(1)

    @pl.when(i == 0)
    def _init():
        acc_ref[...] = jnp.zeros_like(acc_ref)

    t = t_ref[...].astype(jnp.float32)          # (1, tq, S)
    s = s_ref[...].astype(jnp.float32)
    mq = mq_ref[...].astype(jnp.float32)        # (1, tq, 1)  query mask
    mk = mk_ref[...].astype(jnp.float32)        # (1, 1, S)   key mask
    d = (t - s) * mq * mk                       # no [B,1,S,S] outer-product temp
    acc_ref[...] += d * d

    @pl.when(i == pl.num_programs(1) - 1)
    def _fin():
        o_ref[...] = jnp.sum(acc_ref[...]).reshape(1, 1, 1)


def attention_masked_mse(t_att, s_att, mask):
    B, NH, S, _ = t_att.shape
    t2 = t_att.reshape(B * NH, S, S)
    s2 = s_att.reshape(B * NH, S, S)
    mask_q = mask.reshape(B, S, 1)
    mask_k = mask.reshape(B, 1, S)
    tq = _pick_seq_tile(S, S * 4)
    nq = S // tq

    grid_spec = pltpu.PrefetchScalarGridSpec(
        num_scalar_prefetch=0,
        grid=(B * NH, nq),
        in_specs=[
            pl.BlockSpec((1, tq, S), lambda bh, i: (bh, i, 0)),
            pl.BlockSpec((1, tq, S), lambda bh, i: (bh, i, 0)),
            pl.BlockSpec((1, tq, 1), lambda bh, i: (bh // NH, i, 0)),
            pl.BlockSpec((1, 1, S), lambda bh, i: (bh // NH, 0, 0)),
        ],
        out_specs=pl.BlockSpec((1, 1, 1), lambda bh, i: (bh, 0, 0)),
        scratch_shapes=[pltpu.VMEM((1, tq, S), jnp.float32)],
    )
    partials = pl.pallas_call(
        _attention_mse_kernel,
        out_shape=jax.ShapeDtypeStruct((B * NH, 1, 1), jnp.float32),
        grid_spec=grid_spec,
        compiler_params=pltpu.CompilerParams(
            # batch*head axis shards across TensorCores on v7x; neutral on v5e/v6e.
            dimension_semantics=("parallel", "arbitrary"),
            vmem_limit_bytes=_VMEM_LIMIT),
    )(t2, s2, mask_q, mask_k)

    mf = mask.astype(jnp.float32)
    denom = jnp.sum(jnp.sum(mf, axis=-1) ** 2) * float(NH)
    return jnp.sum(partials) / denom


# ---------------------------------------------------------------------------
# Cosine-similarity loss on pooled outputs (tiny; gridless is fine).
# ---------------------------------------------------------------------------

def _cosine_loss_kernel(t_ref, s_ref, o_ref):
    t = t_ref[...].astype(jnp.float32)
    s = s_ref[...].astype(jnp.float32)
    eps = 1e-8
    dot = jnp.sum(t * s, axis=-1, keepdims=True)
    tn = jnp.sqrt(jnp.sum(t * t, axis=-1, keepdims=True))
    sn = jnp.sqrt(jnp.sum(s * s, axis=-1, keepdims=True))
    cos = dot / (jnp.maximum(tn, eps) * jnp.maximum(sn, eps))
    o_ref[...] = jnp.reshape(jnp.mean(1.0 - cos), (1, 1))


def cosine_similarity_loss_impl(t_pool, s_pool):
    fn = pl.pallas_call(
        _cosine_loss_kernel,
        out_shape=jax.ShapeDtypeStruct((1, 1), jnp.float32),
        in_specs=[pl.BlockSpec(memory_space=pltpu.MemorySpace.VMEM)] * 2,
        out_specs=pl.BlockSpec(memory_space=pltpu.MemorySpace.VMEM),
    )
    return fn(t_pool, s_pool)[0, 0]


# ---------------------------------------------------------------------------
# MultiLayerBasedDistillationLoss (JAX version of the nn.Module)
# ---------------------------------------------------------------------------

class MultiLayerBasedDistillationLoss:
    """JAX/Pallas port of the PyTorch MultiLayerBasedDistillationLoss."""

    def __init__(self, distill_config=None, teacher_output_adaptor=None,
                 student_output_adaptor=None):
        self.distill_config = distill_config
        self.teacher_output_adaptor = teacher_output_adaptor
        self.student_output_adaptor = student_output_adaptor
        self._fused_cache = {}
        self.loss_functions = {
            "mse": self._mse,
            "mse_with_mask": self._mse_with_mask,
            "attention_mse_with_mask": self._attention_mse_with_mask,
            "cross_entropy": self._cross_entropy,
            "cos": self._cos,
        }

    # Both `mse` and `mse_with_mask` on the same (teacher, student) hidden-state
    # pair share one streaming pallas_call (cached per forward).
    def _fused_hidden(self, t, s, mask):
        key = (id(t), id(s), id(mask))
        if key not in self._fused_cache:
            self._fused_cache[key] = fused_hidden_losses(t, s, mask)
        return self._fused_cache[key]

    def _mse(self, teacher_output, student_output, teacher_input_data,
             student_input_data):
        mask = None
        if isinstance(teacher_input_data, dict):
            mask = teacher_input_data.get("attention_mask")
        if (teacher_output.ndim == 3 and mask is not None
                and tuple(mask.shape) == tuple(teacher_output.shape[:2])):
            return self._fused_hidden(teacher_output, student_output, mask)[0]
        # TODO(synk): rare non-[B,S,H] mse targets fall back to plain XLA.
        d = (teacher_output.astype(jnp.float32)
             - student_output.astype(jnp.float32))
        return jnp.mean(d * d)

    def _mse_with_mask(self, teacher_output, student_output,
                       teacher_input_data, student_input_data):
        mask = teacher_input_data["attention_mask"]
        return self._fused_hidden(teacher_output, student_output, mask)[1]

    def _attention_mse_with_mask(self, teacher_output, student_output,
                                 teacher_input_data, student_input_data):
        mask = teacher_input_data["attention_mask"]
        return attention_masked_mse(teacher_output, student_output, mask)

    def _cos(self, teacher_output, student_output, teacher_input_data,
             student_input_data):
        return cosine_similarity_loss_impl(teacher_output, student_output)

    def _cross_entropy(self, *args, **kwargs):
        # TODO(synk): nn.CrossEntropyLoss takes 2 positional args; it is not
        # reachable through the 4-arg forward() call pattern, so it is
        # registered for parity but not implemented.
        raise NotImplementedError("cross_entropy is not reachable via forward()")

    def forward(self, teacher_output, student_output, teacher_input_data,
                student_input_data):
        teacher_adaptor_output = self.teacher_output_adaptor(teacher_output)
        student_adaptor_output = self.student_output_adaptor(student_output)
        self._fused_cache = {}          # per-forward fusion cache
        loss = jnp.float32(0.0)
        for distill_info in self.distill_config:
            tmp_teacher_output = teacher_adaptor_output[
                distill_info["teacher_layer_name"]][
                distill_info["teacher_layer_output_name"]]
            tmp_student_output = student_adaptor_output[
                distill_info["student_layer_name"]][
                distill_info["student_layer_output_name"]]
            tmp_loss = self.loss_functions[
                distill_info["loss"]["loss_function"]](
                tmp_teacher_output, tmp_student_output,
                teacher_input_data, student_input_data,
                **distill_info["loss"]["args"])
            tmp_loss = tmp_loss * distill_info["weight"]
            loss = loss + tmp_loss
        return loss

    __call__ = forward


# ---------------------------------------------------------------------------
# Pure-JAX reference (correctness check against the kernels)
# ---------------------------------------------------------------------------

def _ref_total(t_hid, s_hid, t_att, s_att, t_pool, s_pool, mask, weights):
    mse_r = jnp.mean((t_hid - s_hid) ** 2)
    m3 = mask[:, :, None]
    mse_m = jnp.sum(((t_hid - s_hid) * m3) ** 2) / (jnp.sum(mask) * t_hid.shape[-1])
    mk = mask[:, None, None, :] * mask[:, None, :, None]
    att = jnp.sum(((t_att - s_att) * mk) ** 2) / (
        jnp.sum(jnp.sum(mask, -1) ** 2) * t_att.shape[1])
    eps = 1e-8
    cos = jnp.sum(t_pool * s_pool, -1) / (
        jnp.maximum(jnp.linalg.norm(t_pool, axis=-1), eps)
        * jnp.maximum(jnp.linalg.norm(s_pool, axis=-1), eps))
    cosl = jnp.mean(1.0 - cos)
    w = weights
    return w[0] * mse_r + w[1] * mse_m + w[2] * att + w[3] * cosl


# ---------------------------------------------------------------------------
# Main
# ---------------------------------------------------------------------------

if __name__ == "__main__":
    B, S, H, NH = 2, 8, 32, 4

    key = jax.random.PRNGKey(0)
    ks = jax.random.split(key, 7)

    # Deterministic synthetic "model outputs" (teacher & student).
    t_hid = jax.random.normal(ks[0], (B, S, H), jnp.float32)
    s_hid = jax.random.normal(ks[1], (B, S, H), jnp.float32)
    t_att_logits = jax.random.normal(ks[2], (B, NH, S, S), jnp.float32)
    s_att_logits = jax.random.normal(ks[3], (B, NH, S, S), jnp.float32)
    t_att = jax.nn.softmax(t_att_logits, axis=-1)
    s_att = jax.nn.softmax(s_att_logits, axis=-1)
    t_pool = jax.random.normal(ks[4], (B, H), jnp.float32)
    s_pool = jax.random.normal(ks[5], (B, H), jnp.float32)

    # attention_mask: first batch element fully valid, second has 2 pad tokens.
    mask = jnp.array([[1] * S, [1] * (S - 2) + [0, 0]], jnp.float32)

    teacher_output = {"hidden": t_hid, "attention": t_att, "pooled": t_pool}
    student_output = {"hidden": s_hid, "attention": s_att, "pooled": s_pool}
    teacher_input_data = {"attention_mask": mask}
    student_input_data = {"attention_mask": mask}

    # Adaptors: reshape raw model output into {layer_name: {output_name: tensor}}.
    def teacher_adaptor(out):
        return {
            "encoder_last": {"hidden_states": out["hidden"],
                             "attention_probs": out["attention"]},
            "pooler": {"pooled_output": out["pooled"]},
        }

    def student_adaptor(out):
        return {
            "encoder_last": {"hidden_states": out["hidden"],
                             "attention_probs": out["attention"]},
            "pooler": {"pooled_output": out["pooled"]},
        }

    distill_config = [
        {"teacher_layer_name": "encoder_last",
         "teacher_layer_output_name": "hidden_states",
         "student_layer_name": "encoder_last",
         "student_layer_output_name": "hidden_states",
         "loss": {"loss_function": "mse", "args": {}}, "weight": 1.0},
        {"teacher_layer_name": "encoder_last",
         "teacher_layer_output_name": "hidden_states",
         "student_layer_name": "encoder_last",
         "student_layer_output_name": "hidden_states",
         "loss": {"loss_function": "mse_with_mask", "args": {}}, "weight": 0.5},
        {"teacher_layer_name": "encoder_last",
         "teacher_layer_output_name": "attention_probs",
         "student_layer_name": "encoder_last",
         "student_layer_output_name": "attention_probs",
         "loss": {"loss_function": "attention_mse_with_mask", "args": {}},
         "weight": 0.3},
        {"teacher_layer_name": "pooler",
         "teacher_layer_output_name": "pooled_output",
         "student_layer_name": "pooler",
         "student_layer_output_name": "pooled_output",
         "loss": {"loss_function": "cos", "args": {}}, "weight": 0.2},
    ]

    loss_module = MultiLayerBasedDistillationLoss(
        distill_config, teacher_adaptor, student_adaptor)

    loss = loss_module(teacher_output, student_output,
                       teacher_input_data, student_input_data)
    loss = jax.block_until_ready(loss)

    ref = _ref_total(t_hid, s_hid, t_att, s_att, t_pool, s_pool, mask,
                     (1.0, 0.5, 0.3, 0.2))
    assert jnp.allclose(loss, ref, rtol=1e-5, atol=1e-5), (loss, ref)

    print("KERNEL_OK")
</pallas_src>

<mosaic_0001>
module attributes {stable_mosaic.version = 11 : i64} {
  func.func @_fused_hidden_kernel(%arg0: i32, %arg1: memref<2x8x32xf32, #tpu.memory_space<vmem>>, %arg2: memref<2x8x32xf32, #tpu.memory_space<vmem>>, %arg3: memref<2x8x1xf32, #tpu.memory_space<vmem>>, %arg4: memref<1x1xf32, #tpu.memory_space<vmem>>, %arg5: memref<1x1xf32, #tpu.memory_space<vmem>>, %arg6: memref<2x8x32xf32, #tpu.memory_space<vmem>>, %arg7: memref<2x8x32xf32, #tpu.memory_space<vmem>>) attributes {dimension_semantics = [#tpu.dimension_semantics<arbitrary>], iteration_bounds = array<i64: 1>, scalar_prefetch = 0 : i64, scratch_operands = 2 : i64, tpu.core_type = #tpu.core_type<tc>, window_params = [{transform_indices = @transform_0, window_bounds = array<i64: 2, 8, 32>}, {transform_indices = @transform_1, window_bounds = array<i64: 2, 8, 32>}, {transform_indices = @transform_2, window_bounds = array<i64: 2, 8, 1>}, {pipeline_mode = #tpu.pipeline_mode<synchronous>, transform_indices = @transform_3, window_bounds = array<i64: 1, 1>}, {pipeline_mode = #tpu.pipeline_mode<synchronous>, transform_indices = @transform_4, window_bounds = array<i64: 1, 1>}]} {
    %c0_i32 = arith.constant 0 : i32
    %0 = arith.cmpi eq, %arg0, %c0_i32 : i32
    %1 = arith.extui %0 : i1 to i32
    %c0_i32_0 = arith.constant 0 : i32
    %2 = arith.cmpi ne, %1, %c0_i32_0 : i32
    scf.if %2 {
      %cst = arith.constant 0.000000e+00 : f32
      %20 = vector.broadcast %cst : f32 to vector<2x8x32xf32>
      %c0_23 = arith.constant 0 : index
      %c0_24 = arith.constant 0 : index
      %c0_25 = arith.constant 0 : index
      %21 = vector.load %arg6[%c0_23, %c0_24, %c0_25] : memref<2x8x32xf32, #tpu.memory_space<vmem>>, vector<2x8x32xf32>
      tpu.vector_store %arg6[%c0_23, %c0_24, %c0_25], %20 {strides = array<i32>} : memref<2x8x32xf32, #tpu.memory_space<vmem>>, vector<2x8x32xf32>,
      %cst_26 = arith.constant 0.000000e+00 : f32
      %22 = vector.broadcast %cst_26 : f32 to vector<2x8x32xf32>
      %c0_27 = arith.constant 0 : index
      %c0_28 = arith.constant 0 : index
      %c0_29 = arith.constant 0 : index
      %23 = vector.load %arg7[%c0_27, %c0_28, %c0_29] : memref<2x8x32xf32, #tpu.memory_space<vmem>>, vector<2x8x32xf32>
      tpu.vector_store %arg7[%c0_27, %c0_28, %c0_29], %22 {strides = array<i32>} : memref<2x8x32xf32, #tpu.memory_space<vmem>>, vector<2x8x32xf32>,
    } else {
    }
    %c0 = arith.constant 0 : index
    %c0_1 = arith.constant 0 : index
    %c0_2 = arith.constant 0 : index
    %3 = vector.load %arg1[%c0, %c0_1, %c0_2] : memref<2x8x32xf32, #tpu.memory_space<vmem>>, vector<2x8x32xf32>
    %c0_3 = arith.constant 0 : index
    %c0_4 = arith.constant 0 : index
    %c0_5 = arith.constant 0 : index
    %4 = vector.load %arg2[%c0_3, %c0_4, %c0_5] : memref<2x8x32xf32, #tpu.memory_space<vmem>>, vector<2x8x32xf32>
    %c0_6 = arith.constant 0 : index
    %c0_7 = arith.constant 0 : index
    %c0_8 = arith.constant 0 : index
    %5 = vector.load %arg3[%c0_6, %c0_7, %c0_8] : memref<2x8x1xf32, #tpu.memory_space<vmem>>, vector<2x8x1xf32>
    %6 = arith.subf %3, %4 : vector<2x8x32xf32>
    %c0_9 = arith.constant 0 : index
    %c0_10 = arith.constant 0 : index
    %c0_11 = arith.constant 0 : index
    %7 = vector.load %arg6[%c0_9, %c0_10, %c0_11] : memref<2x8x32xf32, #tpu.memory_space<vmem>>, vector<2x8x32xf32>
    %8 = arith.mulf %6, %6 : vector<2x8x32xf32>
    %9 = arith.addf %7, %8 : vector<2x8x32xf32>
    %c0_12 = arith.constant 0 : index
    %c0_13 = arith.constant 0 : index
    %c0_14 = arith.constant 0 : index
    %10 = vector.load %arg6[%c0_12, %c0_13, %c0_14] : memref<2x8x32xf32, #tpu.memory_space<vmem>>, vector<2x8x32xf32>
    tpu.vector_store %arg6[%c0_12, %c0_13, %c0_14], %9 {strides = array<i32>} : memref<2x8x32xf32, #tpu.memory_space<vmem>>, vector<2x8x32xf32>,
    %11 = vector.broadcast %5 : vector<2x8x1xf32> to vector<2x8x32xf32>
    %12 = arith.mulf %6, %11 : vector<2x8x32xf32>
    %c0_15 = arith.constant 0 : index
    %c0_16 = arith.constant 0 : index
    %c0_17 = arith.constant 0 : index
    %13 = vector.load %arg7[%c0_15, %c0_16, %c0_17] : memref<2x8x32xf32, #tpu.memory_space<vmem>>, vector<2x8x32xf32>
    %14 = arith.mulf %12, %12 : vector<2x8x32xf32>
    %15 = arith.addf %13, %14 : vector<2x8x32xf32>
    %c0_18 = arith.constant 0 : index
    %c0_19 = arith.constant 0 : index
    %c0_20 = arith.constant 0 : index
    %16 = vector.load %arg7[%c0_18, %c0_19, %c0_20] : memref<2x8x32xf32, #tpu.memory_space<vmem>>, vector<2x8x32xf32>
    tpu.vector_store %arg7[%c0_18, %c0_19, %c0_20], %15 {strides = array<i32>} : memref<2x8x32xf32, #tpu.memory_space<vmem>>, vector<2x8x32xf32>,
    %c0_i32_21 = arith.constant 0 : i32
    %17 = arith.cmpi eq, %arg0, %c0_i32_21 : i32
    %18 = arith.extui %17 : i1 to i32
    %c0_i32_22 = arith.constant 0 : i32
    %19 = arith.cmpi ne, %18, %c0_i32_22 : i32
    scf.if %19 {
      %c0_23 = arith.constant 0 : index
      %c0_24 = arith.constant 0 : index
      %c0_25 = arith.constant 0 : index
      %20 = vector.load %arg6[%c0_23, %c0_24, %c0_25] : memref<2x8x32xf32, #tpu.memory_space<vmem>>, vector<2x8x32xf32>
      %21 = vector.shape_cast %20 : vector<2x8x32xf32> to vector<1x2x8x32xf32>
      %cst = arith.constant dense<0.000000e+00> : vector<1xf32>
      %22 = vector.multi_reduction <add>, %21, %cst [1, 2, 3] : vector<1x2x8x32xf32> to vector<1xf32>
      %23 = vector.shape_cast %22 : vector<1xf32> to vector<1x1x1x1xf32>
      %24 = vector.extract %23[0, 0, 0, 0] : f32 from vector<1x1x1x1xf32>
      %25 = vector.broadcast %24 : f32 to vector<1x1xf32>
      %c0_26 = arith.constant 0 : index
      %c0_27 = arith.constant 0 : index
      %26 = vector.load %arg4[%c0_26, %c0_27] : memref<1x1xf32, #tpu.memory_space<vmem>>, vector<1x1xf32>
      tpu.vector_store %arg4[%c0_26, %c0_27], %25 {strides = array<i32>} : memref<1x1xf32, #tpu.memory_space<vmem>>, vector<1x1xf32>,
      %c0_28 = arith.constant 0 : index
      %c0_29 = arith.constant 0 : index
      %c0_30 = arith.constant 0 : index
      %27 = vector.load %arg7[%c0_28, %c0_29, %c0_30] : memref<2x8x32xf32, #tpu.memory_space<vmem>>, vector<2x8x32xf32>
      %28 = vector.shape_cast %27 : vector<2x8x32xf32> to vector<1x2x8x32xf32>
      %cst_31 = arith.constant dense<0.000000e+00> : vector<1xf32>
      %29 = vector.multi_reduction <add>, %28, %cst_31 [1, 2, 3] : vector<1x2x8x32xf32> to vector<1xf32>
      %30 = vector.shape_cast %29 : vector<1xf32> to vector<1x1x1x1xf32>
      %31 = vector.extract %30[0, 0, 0, 0] : f32 from vector<1x1x1x1xf32>
      %32 = vector.broadcast %31 : f32 to vector<1x1xf32>
      %c0_32 = arith.constant 0 : index
      %c0_33 = arith.constant 0 : index
      %33 = vector.load %arg5[%c0_32, %c0_33] : memref<1x1xf32, #tpu.memory_space<vmem>>, vector<1x1xf32>
      tpu.vector_store %arg5[%c0_32, %c0_33], %32 {strides = array<i32>} : memref<1x1xf32, #tpu.memory_space<vmem>>, vector<1x1xf32>,
    } else {
    }
    return
  }
  func.func @transform_0(%arg0: i32) -> (i32, i32, i32) {
    %c0_i32 = arith.constant 0 : i32
    %c0_i32_0 = arith.constant 0 : i32
    %c0_i32_1 = arith.constant 0 : i32
    return %c0_i32, %arg0, %c0_i32_0 : i32, i32, i32
  }
  func.func @transform_1(%arg0: i32) -> (i32, i32, i32) {
    %c0_i32 = arith.constant 0 : i32
    %c0_i32_0 = arith.constant 0 : i32
    %c0_i32_1 = arith.constant 0 : i32
    return %c0_i32, %arg0, %c0_i32_0 : i32, i32, i32
  }
  func.func @transform_2(%arg0: i32) -> (i32, i32, i32) {
    %c0_i32 = arith.constant 0 : i32
    %c0_i32_0 = arith.constant 0 : i32
    %c0_i32_1 = arith.constant 0 : i32
    return %c0_i32, %arg0, %c0_i32_0 : i32, i32, i32
  }
  func.func @transform_3(%arg0: i32) -> (i32, i32) {
    %c0_i32 = arith.constant 0 : i32
    %c0_i32_0 = arith.constant 0 : i32
    %c0_i32_1 = arith.constant 0 : i32
    return %c0_i32, %c0_i32_0 : i32, i32
  }
  func.func @transform_4(%arg0: i32) -> (i32, i32) {
    %c0_i32 = arith.constant 0 : i32
    %c0_i32_0 = arith.constant 0 : i32
    %c0_i32_1 = arith.constant 0 : i32
    return %c0_i32, %c0_i32_0 : i32, i32
  }
}

</mosaic_0001>

<bundles_post_ra>
// kernel: tpu_custom_call.1
= control target key start
LH: loop header
LB: loop body
LE: loop exit
PB: predicated region body
PF: predicated region fallthrough
CT: control target
= control target key end

     0   :  { %10 = vsyncpa [#allocation5], 0  ;;  %s321_s0 = inlined_call_operand.vmem [shape: f32[2,8,32], index: 0, kind: input, shape index: {}]   ;;  %s322_s1 = inlined_call_operand.hbm [shape: f32[2,8,32], index: 1, kind: input, shape index: {}]   ;;  %s323_s2 = inlined_call_operand.vmem [shape: f32[2,8,1], index: 2, kind: input, shape index: {}]   ;;  %s324_s3 = inlined_call_operand.hbm [shape: f32[1,1], index: 3, kind: output, shape index: {0}]   ;;  %s325_s4 = inlined_call_operand.hbm [shape: f32[1,1], index: 4, kind: output, shape index: {1}]  }
   0x1   :  { %11 = vsyncpa [#allocation6], 0 }
   0x2   :  { %12 = vsyncpa [#allocation9], 0  ;;  %s227_s15 = smov [#allocation4]   ;;  %s155_s19 = scalar_lea.hbm %s322_s1, 256 }
   0x3   :  { %s20_s16 = sshll.u32 %s227_s15, 4  ;;  %p156_p0 = scmp.ne.s32.totalorder %s322_s1, %s155_s19  ;;  %s21_s16 = int_to_ptr.vmem [resolvable:$true] %s20_s16 }
   0x4   :  { %p159_p1 = scmp.lt.u32.totalorder %s155_s19, %s322_s1 }
   0x6   :  { %p161_p2 = pnand %p159_p1, %p156_p0 }
   0x8   :  { %164 = shalt.err (!%p161_p2)
}
   0x9   :  { %s165_s24 = scalar_lea.vmem %s21_s16, 256  ;;  %p170_p4 = scmp.lt.s32.totalorder %s21_s16, %s21_s16 }
   0xa   :  { %p166_p3 = scmp.ne.s32.totalorder %s21_s16, %s165_s24  ;;  %p171_p5 = scmp.lt.s32.totalorder %s165_s24, %s165_s24 }
   0xc   :  { %p172_p6 = por %p171_p5, %p170_p4 }
   0xe   :  { %p173_p7 = pnand %p172_p6, %p166_p3 }
  0x10   :  { %176 = shalt.err (!%p173_p7)
}
  0x11   :  { %s228_s25 = smov 128   ;;  %s229_s26 = smov 8  }
  0x12   :  { %26 = dma.hbm_to_vmem [thread:$0]  %s322_s1, 256, %s21_s16, [#allocation5], %s228_s25, %s228_s25, %s229_s26  }
  0x13   :  { %221 = dma.done.wait [#allocation5], 256  }
  0x14   :  { %222 = vsyncadd [#allocation5], 4294967040  ;;  %vm36_vm0 = vcmask 261120   ;;  %v230_v0 = vmov 0   ;;  %v231_v1 = vmov 0.0   ;;  %v45_v2 = vld [vmem:[%s323_s2] sm:$0xff] }
  0x15   :  { %154 = vset.pattern.permute.xlu0 %v230_v0  ;;  %37 = vst.msk [vmem:[#allocation2] sm:$0xff] %vm36_vm0, %v231_v1  ;;  %39 = vst.msk [vmem:[#allocation3] sm:$0xff] %vm36_vm0, %v231_v1  ;;  %v41_v3 = vld [vmem:[%s321_s0] sm:$0xff]  ;;  %v46_v5 = vld [vmem:[%s323_s2 + $0x8] sm:$0xff]  ;;  %vm96_vm1 = vcmask 0   ;;  %s232_s2 = smov [#allocation7]  }
  0x16   :  { %38 = vst.msk [vmem:[#allocation2 + $0x8] sm:$0xff] %vm36_vm0, %v231_v1  ;;  %40 = vst.msk [vmem:[#allocation3 + $0x8] sm:$0xff] %vm36_vm0, %v231_v1  ;;  %60 = vperm.xlu0 %154, %v45_v2   ;;  %v43_v4 = vld [vmem:[#allocation4] sm:$0xff]  ;;  %v42_v7 = vld [vmem:[%s321_s0 + $0x8] sm:$0xff]  ;;  %s120_s10 = sshll.u32 %s232_s2, 4  ;;  %s121_s10 = int_to_ptr.vmem [resolvable:$true] %s120_s10 }
  0x17   :  { %v47_v6 = vsub.f32 %v41_v3, %v43_v4  ;;  %v44_v8 = vld [vmem:[#allocation4 + $0x8] sm:$0xff]  ;;  %s177_s11 = scalar_lea.vmem %s121_s10, 16  ;;  %s181_s12 = scalar_lea.vmem %s121_s10, 32 }
  0x18   :  { %v48_v10 = vsub.f32 %v42_v7, %v44_v8  ;;  %p178_p8 = scmp.ne.s32.totalorder %s121_s10, %s177_s11  ;;  %p182_p9 = scmp.lt.s32.totalorder %s121_s10, %s121_s10 }
  0x19   :  { %v51_v11 = vmul.f32 %v47_v6, %v47_v6  ;;  %p183_p10 = scmp.lt.s32.totalorder %s181_s12, %s177_s11 }
  0x1a   :  { %65 = vperm.xlu0 %154, %v46_v5   ;;  %v52_v13 = vmul.f32 %v48_v10, %v48_v10 }
  0x1b   :  { %p184_p11 = por %p183_p10, %p182_p9 }
  0x1c   :  { %v49_v9 = vld [vmem:[#allocation2] sm:$0xff]  ;;  %v70_v23 = vld [vmem:[#allocation3] sm:$0xff] }
  0x1d   :  { %v50_v12 = vld [vmem:[#allocation2 + $0x8] sm:$0xff]  ;;  %v53_v14 = vadd.f32 %v51_v11, %v49_v9  ;;  %v71_v28 = vld [vmem:[#allocation3 + $0x8] sm:$0xff]  ;;  %p185_p12 = pnand %p184_p11, %p178_p8 }
  0x1e   :  { %v54_v15 = vadd.f32 %v52_v13, %v50_v12 }
  0x1f   :  { %56 = vst.msk [vmem:[#allocation2] sm:$0xff] %vm36_vm0, %v53_v14 }
  0x20   :  { %57 = vst.msk [vmem:[#allocation2 + $0x8] sm:$0xff] %vm36_vm0, %v54_v15 }
  0x26   :  { %v81_v16 = vld [vmem:[#allocation2] sm:$0xff] }
  0x27   :  { %v82_v17 = vld [vmem:[#allocation2 + $0x8] sm:$0xff]  ;;  %v83_v18 = vsel %vm36_vm0, %v81_v16, 0.0 }
  0x28   :  { %v84_v19 = vsel %vm36_vm0, %v82_v17, 0.0 }
  0x29   :  { %v85_v20 = vadd.f32 %v84_v19, %v83_v18 }
  0x2b   :  { %86 = vadd.xlane.f32.xlu1 %v85_v20 }
  0x95   :  { %v61_v21 = vpop.permute.xlu0 %60 }
  0x96   :  { %v68_v22 = vmul.f32 %v61_v21, %v47_v6 }
  0x98   :  { %v72_v24 = vmul.f32 %v68_v22, %v68_v22 }
  0x99   :  { %v66_v25 = vpop.permute.xlu0 %65 }
  0x9a   :  { %v74_v26 = vadd.f32 %v72_v24, %v70_v23  ;;  %v69_v27 = vmul.f32 %v66_v25, %v48_v10 }
  0x9c   :  { %76 = vst.msk [vmem:[#allocation3] sm:$0xff] %vm36_vm0, %v74_v26  ;;  %v73_v29 = vmul.f32 %v69_v27, %v69_v27 }
  0x9e   :  { %v75_v30 = vadd.f32 %v73_v29, %v71_v28 }
  0xa0   :  { %77 = vst.msk [vmem:[#allocation3 + $0x8] sm:$0xff] %vm36_vm0, %v75_v30 }
  0xa3   :  { %v98_v31 = vld [vmem:[#allocation3] sm:$0xff] }
  0xa4   :  { %v100_v33 = vsel %vm36_vm0, %v98_v31, 0.0 }
  0xa7   :  { %v99_v32 = vld [vmem:[#allocation3 + $0x8] sm:$0xff] }
  0xa8   :  { %v101_v34 = vsel %vm36_vm0, %v99_v32, 0.0 }
  0xa9   :  { %v102_v35 = vadd.f32 %v101_v34, %v100_v33 }
  0xab   :  { %103 = vadd.xlane.f32.xlu1 %v102_v35 }
  0xb8   :  { %v87_v36 = vpop.xlane.xlu1 %86 }
  0xb9   :  { %v88_v37 = vrot.slane %v87_v36, 4 }
  0xbb   :  { %v89_v38 = vadd.f32 %v88_v37, %v87_v36 }
  0xbd   :  { %v90_v39 = vrot.slane %v89_v38, 2 }
  0xbf   :  { %v91_v40 = vadd.f32 %v90_v39, %v89_v38 }
  0xc1   :  { %v92_v41 = vrot.slane %v91_v40, 1 }
  0xc3   :  { %v93_v42 = vadd.f32 %v92_v41, %v91_v40 }
  0xc5   :  { %143 = vpush %v93_v42 }
  0xf6   :  { %s144_s0 = spop %143 }
  0xf7   :  { %v95_v43 = vstv %s144_s0 }
  0xf8   :  { %97 = vst.msk [vmem:[#allocation7] sm:$0x1] %vm96_vm1, %v95_v43 }
  0xf9   :  { %188 = shalt.err (!%p185_p12)
}
  0xfa   :  { %s189_s15 = scalar_lea.hbm %s324_s3, 16 }
  0xfb   :  { %p190_p13 = scmp.ne.s32.totalorder %s324_s3, %s189_s15  ;;  %p193_p0 = scmp.lt.u32.totalorder %s189_s15, %s324_s3 }
  0xfd   :  { %p195_p1 = pnand %p193_p0, %p190_p13 }
  0xff   :  { %198 = shalt.err (!%p195_p1)
}
 0x100   :  { %123 = dma.vmem_to_hbm [thread:$0]  %s121_s10, 16, %s324_s3, [#allocation6]  }
 0x101   :  { %s233_s22 = smov [#allocation8]  }
 0x102   :  { %s130_s23 = sshll.u32 %s233_s22, 4  ;;  %s131_s23 = int_to_ptr.vmem [resolvable:$true] %s130_s23 }
 0x103   :  { %s199_s25 = scalar_lea.vmem %s131_s23, 16  ;;  %s203_s26 = scalar_lea.vmem %s131_s23, 32 }
 0x104   :  { %p200_p2 = scmp.ne.s32.totalorder %s131_s23, %s199_s25  ;;  %p204_p3 = scmp.lt.s32.totalorder %s131_s23, %s131_s23 }
 0x105   :  { %p205_p4 = scmp.lt.s32.totalorder %s203_s26, %s199_s25 }
 0x107   :  { %p206_p5 = por %p205_p4, %p204_p3 }
 0x109   :  { %p207_p6 = pnand %p206_p5, %p200_p2 }
 0x138   :  { %v104_v44 = vpop.xlane.xlu1 %103 }
 0x139   :  { %v105_v45 = vrot.slane %v104_v44, 4 }
 0x13b   :  { %v106_v46 = vadd.f32 %v105_v45, %v104_v44 }
 0x13d   :  { %v107_v47 = vrot.slane %v106_v46, 2 }
 0x13f   :  { %v108_v48 = vadd.f32 %v107_v47, %v106_v46 }
 0x141   :  { %v109_v49 = vrot.slane %v108_v48, 1 }
 0x143   :  { %v110_v50 = vadd.f32 %v109_v49, %v108_v48 }
 0x145   :  { %145 = vpush %v110_v50 }
 0x176   :  { %s146_s24 = spop %145 }
 0x177   :  { %v112_v51 = vstv %s146_s24 }
 0x178   :  { %113 = vst.msk [vmem:[#allocation8] sm:$0x1] %vm96_vm1, %v112_v51 }
 0x179   :  { %210 = shalt.err (!%p207_p6)
}
 0x17a   :  { %s211_s28 = scalar_lea.hbm %s325_s4, 16 }
 0x17b   :  { %p212_p7 = scmp.ne.s32.totalorder %s325_s4, %s211_s28  ;;  %p215_p8 = scmp.lt.u32.totalorder %s211_s28, %s325_s4 }
 0x17d   :  { %p217_p9 = pnand %p215_p8, %p212_p7 }
 0x17f   :  { %220 = shalt.err (!%p217_p9)
}
 0x180   :  { %133 = dma.vmem_to_hbm [thread:$0]  %s131_s23, 16, %s325_s4, [#allocation9]  }
 0x181   :  { %223 = dma.done.wait [#allocation6], 16  }
 0x182   :  { %224 = vsyncadd [#allocation6], 4294967280 }
 0x183   :  { %225 = dma.done.wait [#allocation9], 16  }
 0x184   :  { %226 = vsyncadd [#allocation9], 4294967280 }
 0x185   :  { %140 = vsyncpa [#allocation5], 1 }
 0x186   :  { %141 = vsyncpa [#allocation6], 1 }
 0x187   :  { %142 = vsyncpa [#allocation9], 1 }

</bundles_post_ra>
